<compile_context>
chip_gen: v5e
topology: v5e:2x2
jax: 0.10.0
libtpu: 0.0.40
codegen_flags: <defaults>
</compile_context>

<pallas_src>
import jax
import jax.numpy as jnp
from jax.experimental import pallas as pl
from jax.experimental.pallas import tpu as pltpu


def decoder_kernel(x_ref, h0_ref,
                   w_i_ref, w_h_ref, b_i_ref, b_hn_ref,
                   w_out_ref, b_out_ref,
                   pred_ref, h_n_ref,
                   xi_scr, hs_scr):
    """Single-invocation fused GRU + Linear.

    x_ref:    (S*B, D)   flattened (time, batch) input
    h0_ref:   (B, H)     initial hidden state
    w_i_ref:  (D, 3H)    fused input->hidden gate weights  [r|z|n]
    w_h_ref:  (H, 3H)    fused hidden->hidden gate weights [r|z|n]
    b_i_ref:  (1, 3H)    fused biases: [b_ir+b_hr | b_iz+b_hz | b_in]
    b_hn_ref: (1, H)     hidden bias of the n gate (stays inside the r-gating)
    w_out_ref:(H, O), b_out_ref:(1, O)   output Linear
    pred_ref: (S*B, O)   prediction writeback (single store)
    h_n_ref:  (B, H)     final hidden state (single store)
    xi_scr:   (S*B, 3H)  precomputed input projection (VMEM scratch)
    hs_scr:   (S*B, H)   accumulated hidden states     (VMEM scratch)
    """
    SB = x_ref.shape[0]
    B, H = h0_ref.shape
    S = SB // B

    # ---- (1) Input projection off the serial path: ONE big MXU matmul over
    # all timesteps, with the r/z/n input-side biases folded in.
    xi_scr[...] = (
        jnp.dot(x_ref[...].astype(jnp.float32), w_i_ref[...],
                preferred_element_type=jnp.float32)
        + b_i_ref[...].astype(jnp.float32))

    # ---- Hoist loop-invariant loads / broadcasts out of the unrolled loop.
    w_h = w_h_ref[...].astype(jnp.float32)                     # (H, 3H)
    b_hn = jnp.broadcast_to(b_hn_ref[...].astype(jnp.float32), (B, H))

    # ---- (2) Serial recurrence (fully unrolled; S is small & static).
    # Only the (B,H)x(H,3H) hidden matmul + gate elementwise math stay on the
    # sequential critical path.
    h = h0_ref[...].astype(jnp.float32)                        # (B, H) carry
    for t in range(S):
        xi_t = xi_scr[t * B:(t + 1) * B, :]                    # (B, 3H)
        gh = jnp.dot(h, w_h, preferred_element_type=jnp.float32)  # (B, 3H)
        rz = jax.nn.sigmoid(xi_t[:, :2 * H] + gh[:, :2 * H])   # one EUP slab
        r = rz[:, :H]
        z = rz[:, H:]
        n = jnp.tanh(xi_t[:, 2 * H:] + r * (gh[:, 2 * H:] + b_hn))
        h = (1.0 - z) * n + z * h
        hs_scr[t * B:(t + 1) * B, :] = h

    # ---- (3) Batched output projection + single writebacks.
    pred = (jnp.dot(hs_scr[...], w_out_ref[...].astype(jnp.float32),
                    preferred_element_type=jnp.float32)
            + b_out_ref[...].astype(jnp.float32))
    pred_ref[...] = pred.astype(pred_ref.dtype)
    h_n_ref[...] = h.astype(h_n_ref.dtype)


def decoder_forward(x, hidden, params):
    """x: (S, B, D) f32, hidden: (1, B, H) f32.

    Returns (prediction (S, B, D), hidden (1, B, H)) matching the PyTorch
    Decoder.forward semantics.
    """
    S, B, D = x.shape
    H = params["w_hr"].shape[0]
    O = params["w_out"].shape[1]
    h0 = hidden[0]                                             # (B, H)

    # Fused gate weights: [r | z | n] along the output dim.
    w_i = jnp.concatenate([params["w_ir"], params["w_iz"], params["w_in"]],
                          axis=1)                              # (D, 3H)
    w_h = jnp.concatenate([params["w_hr"], params["w_hz"], params["w_hn"]],
                          axis=1)                              # (H, 3H)
    # Algebraic bias hoist: b_hr / b_hz fold into the input-side bias; b_hn
    # must stay separate because it sits inside the r-gated term.
    b_i = jnp.concatenate([params["b_ir"] + params["b_hr"],
                           params["b_iz"] + params["b_hz"],
                           params["b_in"]]).reshape(1, 3 * H)
    b_hn = params["b_hn"].reshape(1, H)
    b_out = params["b_out"].reshape(1, O)

    # Flatten (time, batch) outside the kernel so every in-kernel matmul is a
    # clean 2-D MXU shape and writebacks are single contiguous slabs.
    x_flat = x.reshape(S * B, D)

    operands = (x_flat, h0, w_i, w_h, b_i, b_hn, params["w_out"], b_out)

    vmem_spec = lambda: pl.BlockSpec(memory_space=pltpu.MemorySpace.VMEM)

    pred_flat, h_n = pl.pallas_call(
        decoder_kernel,
        out_shape=(
            jax.ShapeDtypeStruct((S * B, O), x.dtype),
            jax.ShapeDtypeStruct((B, H), x.dtype),
        ),
        in_specs=[vmem_spec() for _ in operands],
        out_specs=(vmem_spec(), vmem_spec()),
        scratch_shapes=[
            pltpu.VMEM((S * B, 3 * H), jnp.float32),   # precomputed input proj
            pltpu.VMEM((S * B, H), jnp.float32),       # accumulated hidden states
        ],
    )(*operands)

    return pred_flat.reshape(S, B, O), h_n.reshape(1, B, H)


def decoder_reference(x, hidden, params):
    """Pure-JAX reference matching torch.nn.GRU(output_dim, hidden_dim) + Linear."""
    h0 = hidden[0]

    def step(h, x_t):
        r = jax.nn.sigmoid(x_t @ params["w_ir"] + params["b_ir"]
                           + h @ params["w_hr"] + params["b_hr"])
        z = jax.nn.sigmoid(x_t @ params["w_iz"] + params["b_iz"]
                           + h @ params["w_hz"] + params["b_hz"])
        n = jnp.tanh(x_t @ params["w_in"] + params["b_in"]
                     + r * (h @ params["w_hn"] + params["b_hn"]))
        h_new = (1.0 - z) * n + z * h
        return h_new, h_new

    h_last, outs = jax.lax.scan(step, h0, x)
    pred = outs @ params["w_out"] + params["b_out"]
    return pred, h_last[None]


if __name__ == "__main__":
    key = jax.random.PRNGKey(0)
    S, B, D, H = 8, 2, 4, 32   # seq, batch, output_dim, hidden_dim

    keys = jax.random.split(key, 17)
    scale = 1.0 / jnp.sqrt(jnp.float32(H))

    def u(k, shape):
        return jax.random.uniform(k, shape, jnp.float32, -scale, scale)

    params = {
        # GRU input-to-hidden weights, stored pre-transposed as (D, H)
        "w_ir": u(keys[0], (D, H)), "w_iz": u(keys[1], (D, H)), "w_in": u(keys[2], (D, H)),
        # GRU hidden-to-hidden weights, (H, H)
        "w_hr": u(keys[3], (H, H)), "w_hz": u(keys[4], (H, H)), "w_hn": u(keys[5], (H, H)),
        # GRU biases
        "b_ir": u(keys[6], (H,)), "b_iz": u(keys[7], (H,)), "b_in": u(keys[8], (H,)),
        "b_hr": u(keys[9], (H,)), "b_hz": u(keys[10], (H,)), "b_hn": u(keys[11], (H,)),
        # Output Linear, stored pre-transposed as (H, D)
        "w_out": u(keys[12], (H, D)), "b_out": u(keys[13], (D,)),
    }

    x = jax.random.normal(keys[14], (S, B, D), dtype=jnp.float32)
    hidden = jax.random.normal(keys[15], (1, B, H), dtype=jnp.float32)

    pred, h_n = decoder_forward(x, hidden, params)
    jax.block_until_ready(pred)
    jax.block_until_ready(h_n)

    pred_ref, h_n_ref = decoder_reference(x, hidden, params)

    assert pred.shape == (S, B, D)
    assert h_n.shape == (1, B, H)
    assert jnp.allclose(pred, pred_ref, atol=1e-5, rtol=1e-5), \
        f"prediction mismatch: {jnp.max(jnp.abs(pred - pred_ref))}"
    assert jnp.allclose(h_n, h_n_ref, atol=1e-5, rtol=1e-5), \
        f"hidden mismatch: {jnp.max(jnp.abs(h_n - h_n_ref))}"

    print("KERNEL_OK")
</pallas_src>

<mosaic_0001>
module attributes {stable_mosaic.version = 11 : i64} {
  func.func @decoder_kernel(%arg0: memref<16x4xf32, #tpu.memory_space<vmem>>, %arg1: memref<2x32xf32, #tpu.memory_space<vmem>>, %arg2: memref<4x96xf32, #tpu.memory_space<vmem>>, %arg3: memref<32x96xf32, #tpu.memory_space<vmem>>, %arg4: memref<1x96xf32, #tpu.memory_space<vmem>>, %arg5: memref<1x32xf32, #tpu.memory_space<vmem>>, %arg6: memref<32x4xf32, #tpu.memory_space<vmem>>, %arg7: memref<1x4xf32, #tpu.memory_space<vmem>>, %arg8: memref<16x4xf32, #tpu.memory_space<vmem>>, %arg9: memref<2x32xf32, #tpu.memory_space<vmem>>, %arg10: memref<16x96xf32, #tpu.memory_space<vmem>>, %arg11: memref<16x32xf32, #tpu.memory_space<vmem>>) attributes {dimension_semantics = [], scalar_prefetch = 0 : i64, scratch_operands = 2 : i64, tpu.core_type = #tpu.core_type<tc>} {
    %c0 = arith.constant 0 : index
    %c0_0 = arith.constant 0 : index
    %0 = vector.load %arg0[%c0, %c0_0] : memref<16x4xf32, #tpu.memory_space<vmem>>, vector<16x4xf32>
    %c0_1 = arith.constant 0 : index
    %c0_2 = arith.constant 0 : index
    %1 = vector.load %arg2[%c0_1, %c0_2] : memref<4x96xf32, #tpu.memory_space<vmem>>, vector<4x96xf32>
    %cst = arith.constant dense<0.000000e+00> : vector<16x96xf32>
    %2 = tpu.matmul %0, %1, %cst {dimension_numbers = #tpu.dot_dimension_numbers<[1], [0], [0], [1], [0, 0, 1, 1], [], []>} : vector<16x4xf32>, vector<4x96xf32>, vector<16x96xf32> -> vector<16x96xf32>
    %c0_3 = arith.constant 0 : index
    %c0_4 = arith.constant 0 : index
    %3 = vector.load %arg4[%c0_3, %c0_4] : memref<1x96xf32, #tpu.memory_space<vmem>>, vector<1x96xf32>
    %4 = vector.broadcast %3 : vector<1x96xf32> to vector<16x96xf32>
    %5 = arith.addf %2, %4 : vector<16x96xf32>
    %c0_5 = arith.constant 0 : index
    %c0_6 = arith.constant 0 : index
    %6 = vector.load %arg10[%c0_5, %c0_6] : memref<16x96xf32, #tpu.memory_space<vmem>>, vector<16x96xf32>
    tpu.vector_store %arg10[%c0_5, %c0_6], %5 {strides = array<i32>} : memref<16x96xf32, #tpu.memory_space<vmem>>, vector<16x96xf32>,
    %c0_7 = arith.constant 0 : index
    %c0_8 = arith.constant 0 : index
    %7 = vector.load %arg3[%c0_7, %c0_8] : memref<32x96xf32, #tpu.memory_space<vmem>>, vector<32x96xf32>
    %c0_9 = arith.constant 0 : index
    %c0_10 = arith.constant 0 : index
    %8 = vector.load %arg5[%c0_9, %c0_10] : memref<1x32xf32, #tpu.memory_space<vmem>>, vector<1x32xf32>
    %9 = vector.shape_cast %8 : vector<1x32xf32> to vector<1x32xf32>
    %10 = vector.broadcast %9 : vector<1x32xf32> to vector<2x32xf32>
    %c0_11 = arith.constant 0 : index
    %c0_12 = arith.constant 0 : index
    %11 = vector.load %arg1[%c0_11, %c0_12] : memref<2x32xf32, #tpu.memory_space<vmem>>, vector<2x32xf32>
    %c0_13 = arith.constant 0 : index
    %c0_14 = arith.constant 0 : index
    %12 = vector.load %arg10[%c0_13, %c0_14] : memref<16x96xf32, #tpu.memory_space<vmem>>, vector<2x96xf32>
    %cst_15 = arith.constant dense<0.000000e+00> : vector<2x96xf32>
    %13 = tpu.matmul %11, %7, %cst_15 {dimension_numbers = #tpu.dot_dimension_numbers<[1], [0], [0], [1], [0, 0, 1, 1], [], []>} : vector<2x32xf32>, vector<32x96xf32>, vector<2x96xf32> -> vector<2x96xf32>
    %14 = vector.extract_strided_slice %12 {offsets = [0, 0], sizes = [2, 64], strides = [1, 1]} : vector<2x96xf32> to vector<2x64xf32>
    %15 = vector.extract_strided_slice %13 {offsets = [0, 0], sizes = [2, 64], strides = [1, 1]} : vector<2x96xf32> to vector<2x64xf32>
    %16 = arith.addf %14, %15 : vector<2x64xf32>
    %17 = arith.negf %16 : vector<2x64xf32>
    %18 = math.exp %17 : vector<2x64xf32>
    %cst_16 = arith.constant 1.000000e+00 : f32
    %19 = vector.broadcast %cst_16 : f32 to vector<2x64xf32>
    %20 = arith.addf %19, %18 : vector<2x64xf32>
    %21 = arith.divf %19, %20 : vector<2x64xf32>
    %22 = vector.extract_strided_slice %21 {offsets = [0, 0], sizes = [2, 32], strides = [1, 1]} : vector<2x64xf32> to vector<2x32xf32>
    %23 = vector.extract_strided_slice %21 {offsets = [0, 32], sizes = [2, 32], strides = [1, 1]} : vector<2x64xf32> to vector<2x32xf32>
    %24 = vector.extract_strided_slice %12 {offsets = [0, 64], sizes = [2, 32], strides = [1, 1]} : vector<2x96xf32> to vector<2x32xf32>
    %25 = vector.extract_strided_slice %13 {offsets = [0, 64], sizes = [2, 32], strides = [1, 1]} : vector<2x96xf32> to vector<2x32xf32>
    %26 = arith.addf %25, %10 : vector<2x32xf32>
    %27 = arith.mulf %22, %26 : vector<2x32xf32>
    %28 = arith.addf %24, %27 : vector<2x32xf32>
    %29 = math.tanh %28 : vector<2x32xf32>
    %cst_17 = arith.constant 1.000000e+00 : f32
    %30 = vector.broadcast %cst_17 : f32 to vector<2x32xf32>
    %31 = arith.subf %30, %23 : vector<2x32xf32>
    %32 = arith.mulf %31, %29 : vector<2x32xf32>
    %33 = arith.mulf %23, %11 : vector<2x32xf32>
    %34 = arith.addf %32, %33 : vector<2x32xf32>
    %c0_18 = arith.constant 0 : index
    %c0_19 = arith.constant 0 : index
    %35 = vector.load %arg11[%c0_18, %c0_19] : memref<16x32xf32, #tpu.memory_space<vmem>>, vector<2x32xf32>
    tpu.vector_store %arg11[%c0_18, %c0_19], %34 {strides = array<i32>} : memref<16x32xf32, #tpu.memory_space<vmem>>, vector<2x32xf32>,
    %c2 = arith.constant 2 : index
    %c0_20 = arith.constant 0 : index
    %36 = vector.load %arg10[%c2, %c0_20] : memref<16x96xf32, #tpu.memory_space<vmem>>, vector<2x96xf32>
    %cst_21 = arith.constant dense<0.000000e+00> : vector<2x96xf32>
    %37 = tpu.matmul %34, %7, %cst_21 {dimension_numbers = #tpu.dot_dimension_numbers<[1], [0], [0], [1], [0, 0, 1, 1], [], []>} : vector<2x32xf32>, vector<32x96xf32>, vector<2x96xf32> -> vector<2x96xf32>
    %38 = vector.extract_strided_slice %36 {offsets = [0, 0], sizes = [2, 64], strides = [1, 1]} : vector<2x96xf32> to vector<2x64xf32>
    %39 = vector.extract_strided_slice %37 {offsets = [0, 0], sizes = [2, 64], strides = [1, 1]} : vector<2x96xf32> to vector<2x64xf32>
    %40 = arith.addf %38, %39 : vector<2x64xf32>
    %41 = arith.negf %40 : vector<2x64xf32>
    %42 = math.exp %41 : vector<2x64xf32>
    %cst_22 = arith.constant 1.000000e+00 : f32
    %43 = vector.broadcast %cst_22 : f32 to vector<2x64xf32>
    %44 = arith.addf %43, %42 : vector<2x64xf32>
    %45 = arith.divf %43, %44 : vector<2x64xf32>
    %46 = vector.extract_strided_slice %45 {offsets = [0, 0], sizes = [2, 32], strides = [1, 1]} : vector<2x64xf32> to vector<2x32xf32>
    %47 = vector.extract_strided_slice %45 {offsets = [0, 32], sizes = [2, 32], strides = [1, 1]} : vector<2x64xf32> to vector<2x32xf32>
    %48 = vector.extract_strided_slice %36 {offsets = [0, 64], sizes = [2, 32], strides = [1, 1]} : vector<2x96xf32> to vector<2x32xf32>
    %49 = vector.extract_strided_slice %37 {offsets = [0, 64], sizes = [2, 32], strides = [1, 1]} : vector<2x96xf32> to vector<2x32xf32>
    %50 = arith.addf %49, %10 : vector<2x32xf32>
    %51 = arith.mulf %46, %50 : vector<2x32xf32>
    %52 = arith.addf %48, %51 : vector<2x32xf32>
    %53 = math.tanh %52 : vector<2x32xf32>
    %cst_23 = arith.constant 1.000000e+00 : f32
    %54 = vector.broadcast %cst_23 : f32 to vector<2x32xf32>
    %55 = arith.subf %54, %47 : vector<2x32xf32>
    %56 = arith.mulf %55, %53 : vector<2x32xf32>
    %57 = arith.mulf %47, %34 : vector<2x32xf32>
    %58 = arith.addf %56, %57 : vector<2x32xf32>
    %c2_24 = arith.constant 2 : index
    %c0_25 = arith.constant 0 : index
    %59 = vector.load %arg11[%c2_24, %c0_25] : memref<16x32xf32, #tpu.memory_space<vmem>>, vector<2x32xf32>
    tpu.vector_store %arg11[%c2_24, %c0_25], %58 {strides = array<i32>} : memref<16x32xf32, #tpu.memory_space<vmem>>, vector<2x32xf32>,
    %c4 = arith.constant 4 : index
    %c0_26 = arith.constant 0 : index
    %60 = vector.load %arg10[%c4, %c0_26] : memref<16x96xf32, #tpu.memory_space<vmem>>, vector<2x96xf32>
    %cst_27 = arith.constant dense<0.000000e+00> : vector<2x96xf32>
    %61 = tpu.matmul %58, %7, %cst_27 {dimension_numbers = #tpu.dot_dimension_numbers<[1], [0], [0], [1], [0, 0, 1, 1], [], []>} : vector<2x32xf32>, vector<32x96xf32>, vector<2x96xf32> -> vector<2x96xf32>
    %62 = vector.extract_strided_slice %60 {offsets = [0, 0], sizes = [2, 64], strides = [1, 1]} : vector<2x96xf32> to vector<2x64xf32>
    %63 = vector.extract_strided_slice %61 {offsets = [0, 0], sizes = [2, 64], strides = [1, 1]} : vector<2x96xf32> to vector<2x64xf32>
    %64 = arith.addf %62, %63 : vector<2x64xf32>
    %65 = arith.negf %64 : vector<2x64xf32>
    %66 = math.exp %65 : vector<2x64xf32>
    %cst_28 = arith.constant 1.000000e+00 : f32
    %67 = vector.broadcast %cst_28 : f32 to vector<2x64xf32>
    %68 = arith.addf %67, %66 : vector<2x64xf32>
    %69 = arith.divf %67, %68 : vector<2x64xf32>
    %70 = vector.extract_strided_slice %69 {offsets = [0, 0], sizes = [2, 32], strides = [1, 1]} : vector<2x64xf32> to vector<2x32xf32>
    %71 = vector.extract_strided_slice %69 {offsets = [0, 32], sizes = [2, 32], strides = [1, 1]} : vector<2x64xf32> to vector<2x32xf32>
    %72 = vector.extract_strided_slice %60 {offsets = [0, 64], sizes = [2, 32], strides = [1, 1]} : vector<2x96xf32> to vector<2x32xf32>
    %73 = vector.extract_strided_slice %61 {offsets = [0, 64], sizes = [2, 32], strides = [1, 1]} : vector<2x96xf32> to vector<2x32xf32>
    %74 = arith.addf %73, %10 : vector<2x32xf32>
    %75 = arith.mulf %70, %74 : vector<2x32xf32>
    %76 = arith.addf %72, %75 : vector<2x32xf32>
    %77 = math.tanh %76 : vector<2x32xf32>
    %cst_29 = arith.constant 1.000000e+00 : f32
    %78 = vector.broadcast %cst_29 : f32 to vector<2x32xf32>
    %79 = arith.subf %78, %71 : vector<2x32xf32>
    %80 = arith.mulf %79, %77 : vector<2x32xf32>
    %81 = arith.mulf %71, %58 : vector<2x32xf32>
    %82 = arith.addf %80, %81 : vector<2x32xf32>
    %c4_30 = arith.constant 4 : index
    %c0_31 = arith.constant 0 : index
    %83 = vector.load %arg11[%c4_30, %c0_31] : memref<16x32xf32, #tpu.memory_space<vmem>>, vector<2x32xf32>
    tpu.vector_store %arg11[%c4_30, %c0_31], %82 {strides = array<i32>} : memref<16x32xf32, #tpu.memory_space<vmem>>, vector<2x32xf32>,
    %c6 = arith.constant 6 : index
    %c0_32 = arith.constant 0 : index
    %84 = vector.load %arg10[%c6, %c0_32] : memref<16x96xf32, #tpu.memory_space<vmem>>, vector<2x96xf32>
    %cst_33 = arith.constant dense<0.000000e+00> : vector<2x96xf32>
    %85 = tpu.matmul %82, %7, %cst_33 {dimension_numbers = #tpu.dot_dimension_numbers<[1], [0], [0], [1], [0, 0, 1, 1], [], []>} : vector<2x32xf32>, vector<32x96xf32>, vector<2x96xf32> -> vector<2x96xf32>
    %86 = vector.extract_strided_slice %84 {offsets = [0, 0], sizes = [2, 64], strides = [1, 1]} : vector<2x96xf32> to vector<2x64xf32>
    %87 = vector.extract_strided_slice %85 {offsets = [0, 0], sizes = [2, 64], strides = [1, 1]} : vector<2x96xf32> to vector<2x64xf32>
    %88 = arith.addf %86, %87 : vector<2x64xf32>
    %89 = arith.negf %88 : vector<2x64xf32>
    %90 = math.exp %89 : vector<2x64xf32>
    %cst_34 = arith.constant 1.000000e+00 : f32
    %91 = vector.broadcast %cst_34 : f32 to vector<2x64xf32>
    %92 = arith.addf %91, %90 : vector<2x64xf32>
    %93 = arith.divf %91, %92 : vector<2x64xf32>
    %94 = vector.extract_strided_slice %93 {offsets = [0, 0], sizes = [2, 32], strides = [1, 1]} : vector<2x64xf32> to vector<2x32xf32>
    %95 = vector.extract_strided_slice %93 {offsets = [0, 32], sizes = [2, 32], strides = [1, 1]} : vector<2x64xf32> to vector<2x32xf32>
    %96 = vector.extract_strided_slice %84 {offsets = [0, 64], sizes = [2, 32], strides = [1, 1]} : vector<2x96xf32> to vector<2x32xf32>
    %97 = vector.extract_strided_slice %85 {offsets = [0, 64], sizes = [2, 32], strides = [1, 1]} : vector<2x96xf32> to vector<2x32xf32>
    %98 = arith.addf %97, %10 : vector<2x32xf32>
    %99 = arith.mulf %94, %98 : vector<2x32xf32>
    %100 = arith.addf %96, %99 : vector<2x32xf32>
    %101 = math.tanh %100 : vector<2x32xf32>
    %cst_35 = arith.constant 1.000000e+00 : f32
    %102 = vector.broadcast %cst_35 : f32 to vector<2x32xf32>
    %103 = arith.subf %102, %95 : vector<2x32xf32>
    %104 = arith.mulf %103, %101 : vector<2x32xf32>
    %105 = arith.mulf %95, %82 : vector<2x32xf32>
    %106 = arith.addf %104, %105 : vector<2x32xf32>
    %c6_36 = arith.constant 6 : index
    %c0_37 = arith.constant 0 : index
    %107 = vector.load %arg11[%c6_36, %c0_37] : memref<16x32xf32, #tpu.memory_space<vmem>>, vector<2x32xf32>
    tpu.vector_store %arg11[%c6_36, %c0_37], %106 {strides = array<i32>} : memref<16x32xf32, #tpu.memory_space<vmem>>, vector<2x32xf32>,
    %c8 = arith.constant 8 : index
    %c0_38 = arith.constant 0 : index
    %108 = vector.load %arg10[%c8, %c0_38] : memref<16x96xf32, #tpu.memory_space<vmem>>, vector<2x96xf32>
    %cst_39 = arith.constant dense<0.000000e+00> : vector<2x96xf32>
    %109 = tpu.matmul %106, %7, %cst_39 {dimension_numbers = #tpu.dot_dimension_numbers<[1], [0], [0], [1], [0, 0, 1, 1], [], []>} : vector<2x32xf32>, vector<32x96xf32>, vector<2x96xf32> -> vector<2x96xf32>
    %110 = vector.extract_strided_slice %108 {offsets = [0, 0], sizes = [2, 64], strides = [1, 1]} : vector<2x96xf32> to vector<2x64xf32>
    %111 = vector.extract_strided_slice %109 {offsets = [0, 0], sizes = [2, 64], strides = [1, 1]} : vector<2x96xf32> to vector<2x64xf32>
    %112 = arith.addf %110, %111 : vector<2x64xf32>
    %113 = arith.negf %112 : vector<2x64xf32>
    %114 = math.exp %113 : vector<2x64xf32>
    %cst_40 = arith.constant 1.000000e+00 : f32
    %115 = vector.broadcast %cst_40 : f32 to vector<2x64xf32>
    %116 = arith.addf %115, %114 : vector<2x64xf32>
    %117 = arith.divf %115, %116 : vector<2x64xf32>
    %118 = vector.extract_strided_slice %117 {offsets = [0, 0], sizes = [2, 32], strides = [1, 1]} : vector<2x64xf32> to vector<2x32xf32>
    %119 = vector.extract_strided_slice %117 {offsets = [0, 32], sizes = [2, 32], strides = [1, 1]} : vector<2x64xf32> to vector<2x32xf32>
    %120 = vector.extract_strided_slice %108 {offsets = [0, 64], sizes = [2, 32], strides = [1, 1]} : vector<2x96xf32> to vector<2x32xf32>
    %121 = vector.extract_strided_slice %109 {offsets = [0, 64], sizes = [2, 32], strides = [1, 1]} : vector<2x96xf32> to vector<2x32xf32>
    %122 = arith.addf %121, %10 : vector<2x32xf32>
    %123 = arith.mulf %118, %122 : vector<2x32xf32>
    %124 = arith.addf %120, %123 : vector<2x32xf32>
    %125 = math.tanh %124 : vector<2x32xf32>
    %cst_41 = arith.constant 1.000000e+00 : f32
    %126 = vector.broadcast %cst_41 : f32 to vector<2x32xf32>
    %127 = arith.subf %126, %119 : vector<2x32xf32>
    %128 = arith.mulf %127, %125 : vector<2x32xf32>
    %129 = arith.mulf %119, %106 : vector<2x32xf32>
    %130 = arith.addf %128, %129 : vector<2x32xf32>
    %c8_42 = arith.constant 8 : index
    %c0_43 = arith.constant 0 : index
    %131 = vector.load %arg11[%c8_42, %c0_43] : memref<16x32xf32, #tpu.memory_space<vmem>>, vector<2x32xf32>
    tpu.vector_store %arg11[%c8_42, %c0_43], %130 {strides = array<i32>} : memref<16x32xf32, #tpu.memory_space<vmem>>, vector<2x32xf32>,
    %c10 = arith.constant 10 : index
    %c0_44 = arith.constant 0 : index
    %132 = vector.load %arg10[%c10, %c0_44] : memref<16x96xf32, #tpu.memory_space<vmem>>, vector<2x96xf32>
    %cst_45 = arith.constant dense<0.000000e+00> : vector<2x96xf32>
    %133 = tpu.matmul %130, %7, %cst_45 {dimension_numbers = #tpu.dot_dimension_numbers<[1], [0], [0], [1], [0, 0, 1, 1], [], []>} : vector<2x32xf32>, vector<32x96xf32>, vector<2x96xf32> -> vector<2x96xf32>
    %134 = vector.extract_strided_slice %132 {offsets = [0, 0], sizes = [2, 64], strides = [1, 1]} : vector<2x96xf32> to vector<2x64xf32>
    %135 = vector.extract_strided_slice %133 {offsets = [0, 0], sizes = [2, 64], strides = [1, 1]} : vector<2x96xf32> to vector<2x64xf32>
    %136 = arith.addf %134, %135 : vector<2x64xf32>
    %137 = arith.negf %136 : vector<2x64xf32>
    %138 = math.exp %137 : vector<2x64xf32>
    %cst_46 = arith.constant 1.000000e+00 : f32
    %139 = vector.broadcast %cst_46 : f32 to vector<2x64xf32>
    %140 = arith.addf %139, %138 : vector<2x64xf32>
    %141 = arith.divf %139, %140 : vector<2x64xf32>
    %142 = vector.extract_strided_slice %141 {offsets = [0, 0], sizes = [2, 32], strides = [1, 1]} : vector<2x64xf32> to vector<2x32xf32>
    %143 = vector.extract_strided_slice %141 {offsets = [0, 32], sizes = [2, 32], strides = [1, 1]} : vector<2x64xf32> to vector<2x32xf32>
    %144 = vector.extract_strided_slice %132 {offsets = [0, 64], sizes = [2, 32], strides = [1, 1]} : vector<2x96xf32> to vector<2x32xf32>
    %145 = vector.extract_strided_slice %133 {offsets = [0, 64], sizes = [2, 32], strides = [1, 1]} : vector<2x96xf32> to vector<2x32xf32>
    %146 = arith.addf %145, %10 : vector<2x32xf32>
    %147 = arith.mulf %142, %146 : vector<2x32xf32>
    %148 = arith.addf %144, %147 : vector<2x32xf32>
    %149 = math.tanh %148 : vector<2x32xf32>
    %cst_47 = arith.constant 1.000000e+00 : f32
    %150 = vector.broadcast %cst_47 : f32 to vector<2x32xf32>
    %151 = arith.subf %150, %143 : vector<2x32xf32>
    %152 = arith.mulf %151, %149 : vector<2x32xf32>
    %153 = arith.mulf %143, %130 : vector<2x32xf32>
    %154 = arith.addf %152, %153 : vector<2x32xf32>
    %c10_48 = arith.constant 10 : index
    %c0_49 = arith.constant 0 : index
    %155 = vector.load %arg11[%c10_48, %c0_49] : memref<16x32xf32, #tpu.memory_space<vmem>>, vector<2x32xf32>
    tpu.vector_store %arg11[%c10_48, %c0_49], %154 {strides = array<i32>} : memref<16x32xf32, #tpu.memory_space<vmem>>, vector<2x32xf32>,
    %c12 = arith.constant 12 : index
    %c0_50 = arith.constant 0 : index
    %156 = vector.load %arg10[%c12, %c0_50] : memref<16x96xf32, #tpu.memory_space<vmem>>, vector<2x96xf32>
    %cst_51 = arith.constant dense<0.000000e+00> : vector<2x96xf32>
    %157 = tpu.matmul %154, %7, %cst_51 {dimension_numbers = #tpu.dot_dimension_numbers<[1], [0], [0], [1], [0, 0, 1, 1], [], []>} : vector<2x32xf32>, vector<32x96xf32>, vector<2x96xf32> -> vector<2x96xf32>
    %158 = vector.extract_strided_slice %156 {offsets = [0, 0], sizes = [2, 64], strides = [1, 1]} : vector<2x96xf32> to vector<2x64xf32>
    %159 = vector.extract_strided_slice %157 {offsets = [0, 0], sizes = [2, 64], strides = [1, 1]} : vector<2x96xf32> to vector<2x64xf32>
    %160 = arith.addf %158, %159 : vector<2x64xf32>
    %161 = arith.negf %160 : vector<2x64xf32>
    %162 = math.exp %161 : vector<2x64xf32>
    %cst_52 = arith.constant 1.000000e+00 : f32
    %163 = vector.broadcast %cst_52 : f32 to vector<2x64xf32>
    %164 = arith.addf %163, %162 : vector<2x64xf32>
    %165 = arith.divf %163, %164 : vector<2x64xf32>
    %166 = vector.extract_strided_slice %165 {offsets = [0, 0], sizes = [2, 32], strides = [1, 1]} : vector<2x64xf32> to vector<2x32xf32>
    %167 = vector.extract_strided_slice %165 {offsets = [0, 32], sizes = [2, 32], strides = [1, 1]} : vector<2x64xf32> to vector<2x32xf32>
    %168 = vector.extract_strided_slice %156 {offsets = [0, 64], sizes = [2, 32], strides = [1, 1]} : vector<2x96xf32> to vector<2x32xf32>
    %169 = vector.extract_strided_slice %157 {offsets = [0, 64], sizes = [2, 32], strides = [1, 1]} : vector<2x96xf32> to vector<2x32xf32>
    %170 = arith.addf %169, %10 : vector<2x32xf32>
    %171 = arith.mulf %166, %170 : vector<2x32xf32>
    %172 = arith.addf %168, %171 : vector<2x32xf32>
    %173 = math.tanh %172 : vector<2x32xf32>
    %cst_53 = arith.constant 1.000000e+00 : f32
    %174 = vector.broadcast %cst_53 : f32 to vector<2x32xf32>
    %175 = arith.subf %174, %167 : vector<2x32xf32>
    %176 = arith.mulf %175, %173 : vector<2x32xf32>
    %177 = arith.mulf %167, %154 : vector<2x32xf32>
    %178 = arith.addf %176, %177 : vector<2x32xf32>
    %c12_54 = arith.constant 12 : index
    %c0_55 = arith.constant 0 : index
    %179 = vector.load %arg11[%c12_54, %c0_55] : memref<16x32xf32, #tpu.memory_space<vmem>>, vector<2x32xf32>
    tpu.vector_store %arg11[%c12_54, %c0_55], %178 {strides = array<i32>} : memref<16x32xf32, #tpu.memory_space<vmem>>, vector<2x32xf32>,
    %c14 = arith.constant 14 : index
    %c0_56 = arith.constant 0 : index
    %180 = vector.load %arg10[%c14, %c0_56] : memref<16x96xf32, #tpu.memory_space<vmem>>, vector<2x96xf32>
    %cst_57 = arith.constant dense<0.000000e+00> : vector<2x96xf32>
    %181 = tpu.matmul %178, %7, %cst_57 {dimension_numbers = #tpu.dot_dimension_numbers<[1], [0], [0], [1], [0, 0, 1, 1], [], []>} : vector<2x32xf32>, vector<32x96xf32>, vector<2x96xf32> -> vector<2x96xf32>
    %182 = vector.extract_strided_slice %180 {offsets = [0, 0], sizes = [2, 64], strides = [1, 1]} : vector<2x96xf32> to vector<2x64xf32>
    %183 = vector.extract_strided_slice %181 {offsets = [0, 0], sizes = [2, 64], strides = [1, 1]} : vector<2x96xf32> to vector<2x64xf32>
    %184 = arith.addf %182, %183 : vector<2x64xf32>
    %185 = arith.negf %184 : vector<2x64xf32>
    %186 = math.exp %185 : vector<2x64xf32>
    %cst_58 = arith.constant 1.000000e+00 : f32
    %187 = vector.broadcast %cst_58 : f32 to vector<2x64xf32>
    %188 = arith.addf %187, %186 : vector<2x64xf32>
    %189 = arith.divf %187, %188 : vector<2x64xf32>
    %190 = vector.extract_strided_slice %189 {offsets = [0, 0], sizes = [2, 32], strides = [1, 1]} : vector<2x64xf32> to vector<2x32xf32>
    %191 = vector.extract_strided_slice %189 {offsets = [0, 32], sizes = [2, 32], strides = [1, 1]} : vector<2x64xf32> to vector<2x32xf32>
    %192 = vector.extract_strided_slice %180 {offsets = [0, 64], sizes = [2, 32], strides = [1, 1]} : vector<2x96xf32> to vector<2x32xf32>
    %193 = vector.extract_strided_slice %181 {offsets = [0, 64], sizes = [2, 32], strides = [1, 1]} : vector<2x96xf32> to vector<2x32xf32>
    %194 = arith.addf %193, %10 : vector<2x32xf32>
    %195 = arith.mulf %190, %194 : vector<2x32xf32>
    %196 = arith.addf %192, %195 : vector<2x32xf32>
    %197 = math.tanh %196 : vector<2x32xf32>
    %cst_59 = arith.constant 1.000000e+00 : f32
    %198 = vector.broadcast %cst_59 : f32 to vector<2x32xf32>
    %199 = arith.subf %198, %191 : vector<2x32xf32>
    %200 = arith.mulf %199, %197 : vector<2x32xf32>
    %201 = arith.mulf %191, %178 : vector<2x32xf32>
    %202 = arith.addf %200, %201 : vector<2x32xf32>
    %c14_60 = arith.constant 14 : index
    %c0_61 = arith.constant 0 : index
    %203 = vector.load %arg11[%c14_60, %c0_61] : memref<16x32xf32, #tpu.memory_space<vmem>>, vector<2x32xf32>
    tpu.vector_store %arg11[%c14_60, %c0_61], %202 {strides = array<i32>} : memref<16x32xf32, #tpu.memory_space<vmem>>, vector<2x32xf32>,
    %c0_62 = arith.constant 0 : index
    %c0_63 = arith.constant 0 : index
    %204 = vector.load %arg11[%c0_62, %c0_63] : memref<16x32xf32, #tpu.memory_space<vmem>>, vector<16x32xf32>
    %c0_64 = arith.constant 0 : index
    %c0_65 = arith.constant 0 : index
    %205 = vector.load %arg6[%c0_64, %c0_65] : memref<32x4xf32, #tpu.memory_space<vmem>>, vector<32x4xf32>
    %cst_66 = arith.constant dense<0.000000e+00> : vector<16x4xf32>
    %206 = tpu.matmul %204, %205, %cst_66 {dimension_numbers = #tpu.dot_dimension_numbers<[1], [0], [0], [1], [0, 0, 1, 1], [], []>} : vector<16x32xf32>, vector<32x4xf32>, vector<16x4xf32> -> vector<16x4xf32>
    %c0_67 = arith.constant 0 : index
    %c0_68 = arith.constant 0 : index
    %207 = vector.load %arg7[%c0_67, %c0_68] : memref<1x4xf32, #tpu.memory_space<vmem>>, vector<1x4xf32>
    %208 = vector.broadcast %207 : vector<1x4xf32> to vector<16x4xf32>
    %209 = arith.addf %206, %208 : vector<16x4xf32>
    %c0_69 = arith.constant 0 : index
    %c0_70 = arith.constant 0 : index
    %210 = vector.load %arg8[%c0_69, %c0_70] : memref<16x4xf32, #tpu.memory_space<vmem>>, vector<16x4xf32>
    tpu.vector_store %arg8[%c0_69, %c0_70], %209 {strides = array<i32>} : memref<16x4xf32, #tpu.memory_space<vmem>>, vector<16x4xf32>,
    %c0_71 = arith.constant 0 : index
    %c0_72 = arith.constant 0 : index
    %211 = vector.load %arg9[%c0_71, %c0_72] : memref<2x32xf32, #tpu.memory_space<vmem>>, vector<2x32xf32>
    tpu.vector_store %arg9[%c0_71, %c0_72], %202 {strides = array<i32>} : memref<2x32xf32, #tpu.memory_space<vmem>>, vector<2x32xf32>,
    return
  }
}

</mosaic_0001>

<bundles_post_ra>
// kernel: tpu_custom_call.1
= control target key start
LH: loop header
LB: loop body
LE: loop exit
PB: predicated region body
PF: predicated region fallthrough
CT: control target
= control target key end

     0   :  { %vm46_vm0 = vcmask 1043456   ;;  %vm39_vm1 = vcmask 31744   ;;  %s801_s22 = smov 32   ;;  %s802_s25 = smov 64   ;;  %s1025_s0 = inlined_call_operand.vmem [shape: f32[16,4], index: 0, kind: input, shape index: {}]   ;;  %s1026_s1 = inlined_call_operand.vmem [shape: f32[2,32], index: 1, kind: input, shape index: {}]   ;;  %s1027_s2 = inlined_call_operand.vmem [shape: f32[4,96], index: 2, kind: input, shape index: {}]   ;;  %s1028_s3 = inlined_call_operand.vmem [shape: f32[32,96], index: 3, kind: input, shape index: {}]   ;;  %s1029_s4 = inlined_call_operand.vmem [shape: f32[1,96], index: 4, kind: input, shape index: {}]   ;;  %s1030_s5 = inlined_call_operand.vmem [shape: f32[1,32], index: 5, kind: input, shape index: {}]   ;;  %s1031_s6 = inlined_call_operand.vmem [shape: f32[32,4], index: 6, kind: input, shape index: {}]   ;;  %s1032_s7 = inlined_call_operand.vmem [shape: f32[1,4], index: 7, kind: input, shape index: {}]   ;;  %s1033_s8 = inlined_call_operand.vmem [shape: f32[16,4], index: 8, kind: output, shape index: {0}]   ;;  %s1034_s9 = inlined_call_operand.hbm [shape: f32[2,32], index: 9, kind: output, shape index: {1}]  }
   0x1   :  { %v34_v0 = vld [vmem:[%s1027_s2] sm:$0xf]  ;;  %v861_v1 = vld [vmem:[%s1028_s3 + $0x18] sm:$0xff]  ;;  %v870_v3 = vld [vmem:[%s1028_s3 + $0x10] sm:$0xff] }
   0x2   :  { %v32_v2 = vld [vmem:[%s1025_s0] sm:$0xff]  ;;  %699 = vmatpush.msk.msra.mxu0 %vm46_vm0, %v34_v0  ;;  %101 = vmatpush.msra.mxu1 %v861_v1  ;;  %v875_v4 = vld [vmem:[%s1028_s3 + $0x8] sm:$0xff] }
   0x3   :  { %700 = vmatmul.msk.f32.vlgmr.msra.gmra.mxu0 %vm39_vm1, %v32_v2  ;;  %v83_v5 = vld [vmem:[%s1026_s1] sm:$0x3]  ;;  %176 = vmatpush.msra.mxu3 %v861_v1 }
   0x4   :  { %v724_v6 = vld [vmem:[%s1030_s5] ss:$0 sm:$0xff]  ;;  %102 = vmatpush.msra.mxu1 %v870_v3  ;;  %150 = vrot.lane.b32.xlu2 %v83_v5, %s801_s22 }
   0x5   :  { %v889_v7 = vld [vmem:[%s1028_s3] sm:$0xff]  ;;  %129 = vrot.lane.b32.xlu0 %v724_v6, %s802_s25  ;;  %177 = vmatpush.msra.mxu3 %v870_v3 }
   0x6   :  { %15 = vsyncpa [#allocation5], 0  ;;  %103 = vmatpush.msra.mxu1 %v875_v4  ;;  %vm85_vm2 = vcmask 261120   ;;  %380 = vmatpush.msra.mxu2 %v861_v1  ;;  %v921_v8 = vld [vmem:[%s1029_s4] ss:$0 sm:$0xff]  ;;  %vm73_vm3 = vcmask 785408  }
   0x7   :  { %178 = vmatpush.msra.mxu3 %v875_v4  ;;  %516 = vmatpush.msrb.mxu0 %v861_v1  ;;  %s803_s4 = smov 96   ;;  %vm159_vm8 = vcmask 254976   ;;  %s688_s18 = sshll.u32 %s1034_s9, 4  ;;  %s689_s18 = int_to_ptr.hbm [resolvable:$true] %s688_s18 }
   0x8   :  { %104 = vmatpush.msra.mxu1 %v889_v7  ;;  %381 = vmatpush.msra.mxu2 %v870_v3 }
   0x9   :  { %702 = vmatmul.msk.f32.vlgmr.msra.gmra.mxu1 %vm85_vm2, %v83_v5  ;;  %179 = vmatpush.msra.mxu3 %v889_v7 }
   0xa   :  { %312 = vmatpush.msrb.mxu1 %v861_v1  ;;  %382 = vmatpush.msra.mxu2 %v875_v4 }
   0xb   :  { %244 = vmatpush.msrb.mxu3 %v861_v1  ;;  %517 = vmatpush.msrb.mxu0 %v870_v3 }
   0xc   :  { %313 = vmatpush.msrb.mxu1 %v870_v3  ;;  %383 = vmatpush.msra.mxu2 %v889_v7 }
   0xd   :  { %245 = vmatpush.msrb.mxu3 %v870_v3  ;;  %518 = vmatpush.msrb.mxu0 %v875_v4 }
   0xe   :  { %314 = vmatpush.msrb.mxu1 %v875_v4 }
   0xf   :  { %246 = vmatpush.msrb.mxu3 %v875_v4  ;;  %519 = vmatpush.msrb.mxu0 %v889_v7 }
  0x10   :  { %315 = vmatpush.msrb.mxu1 %v889_v7 }
  0x11   :  { %247 = vmatpush.msrb.mxu3 %v889_v7 }
  0x12   :  { %584 = vmatpush.msra.mxu1 %v861_v1 }
  0x14   :  { %585 = vmatpush.msra.mxu1 %v870_v3 }
  0x16   :  { %586 = vmatpush.msra.mxu1 %v875_v4 }
  0x18   :  { %587 = vmatpush.msra.mxu1 %v889_v7 }
  0x5e   :  { %v151_v34 = vpop.permute.xlu2 %150 }
  0x77   :  { %v925_v11 = vpop.permute.xlu0 %129 }
  0x80   :  { %v67_v9 = vpop.f32.mrf.mxu0 }
  0x81   :  { %v68_v10 = vadd.f32 %v921_v8, %v67_v9 }
  0x83   :  { %74 = vst.msk [vmem:[#allocation2] sm:$0xff] %vm73_vm3, %v68_v10 }
  0x86   :  { %v106_v12 = vpop.f32.mrf.mxu1 }
  0x87   :  { %v132_v13 = vadd.f32 %v925_v11, %v106_v12 }
  0x89   :  { %134 = vrot.lane.b32.xlu0 %v132_v13, %s802_s25 }
  0x8a   :  { %v84_v14 = vld [vmem:[#allocation2] sm:$0x3]  ;;  %v161_v43 = vld [vmem:[#allocation2 + $0x2] sm:$0x3] }
  0x8b   :  { %v109_v15 = vadd.f32 %v106_v12, %v84_v14 }
  0x8d   :  { %v703_v16 = vmul.f32 -1.442695, %v109_v15 }
  0x8f   :  { %727 = vpow2.f32 %v703_v16 }
  0x95   :  { %v728_v17 = vpop.eup %727 }
  0x96   :  { %v113_v18 = vadd.f32 1.0, %v728_v17 }
  0x98   :  { %729 = vrcp.f32 %v113_v18  ;;  %v125_v24 = vand.u32 2147483648, %v113_v18  ;;  %vm119_vm5 = vweird.f32 %v113_v18  ;;  %v123_v25 = vand.u32 2147483647, %v113_v18 }
  0x9a   :  { %v126_v27 = vor.u32 1.1754944e-38, %v125_v24  ;;  %vm124_vm7 = vcmp.eq.f32.partialorder %v123_v25, 8.507059e+37 }
  0x9e   :  { %v730_v19 = vpop.eup %729 }
  0x9f   :  { %v115_v20 = vmul.f32 %v730_v19, %v113_v18  ;;  %vm120_vm4 = vweird.f32 %v730_v19 }
  0xa0   :  { %vm121_vm6 = vmor %vm119_vm5, %vm120_vm4 }
  0xa1   :  { %v116_v21 = vsub.f32 1.0, %v115_v20 }
  0xa3   :  { %v117_v22 = vmul.f32 %v730_v19, %v116_v21 }
  0xa5   :  { %v118_v23 = vadd.f32 %v730_v19, %v117_v22 }
  0xa7   :  { %v122_v26 = vsel %vm121_vm6, %v730_v19, %v118_v23 }
  0xa8   :  { %v127_v28 = vsel %vm124_vm7, %v126_v27, %v122_v26 }
  0xa9   :  { %v144_v35 = vsub.f32 1.0, %v127_v28  ;;  %v153_v37 = vmul.f32 %v151_v34, %v127_v28 }
  0xfb   :  { %v135_v29 = vpop.permute.xlu0 %134 }
  0xfc   :  { %v137_v30 = vmul.f32 %v135_v29, %v127_v28 }
  0xfe   :  { %139 = vrot.lane.b32.xlu1 %v137_v30, %s802_s25 }
 0x170   :  { %v140_v31 = vpop.permute.xlu1 %139 }
 0x171   :  { %v142_v32 = vadd.f32 %v140_v31, %v84_v14 }
 0x173   :  { %731 = vtanh.f32 %v142_v32 }
 0x179   :  { %v732_v33 = vpop.eup %731 }
 0x17a   :  { %146 = vrot.lane.b32.xlu1 %v732_v33, %s803_s4 }
 0x1ec   :  { %v147_v36 = vpop.permute.xlu1 %146 }
 0x1ed   :  { %v149_v38 = vmul.f32 %v147_v36, %v144_v35 }
 0x1ef   :  { %v154_v39 = vadd.f32 %v153_v37, %v149_v38  ;;  %v297_v37 = vld [vmem:[#allocation2 + $0x6] sm:$0x3] }
 0x1f1   :  { %156 = vrot.lane.b32.xlu2 %v154_v39, %s803_s4 }
 0x24b   :  { %v157_v40 = vpop.permute.xlu2 %156 }
 0x24c   :  { %160 = vst.msk [vmem:[#allocation3] sm:$0x3] %vm159_vm8, %v157_v40  ;;  %704 = vmatmul.msk.f32.vlgmr.msra.gmra.mxu3 %vm85_vm2, %v157_v40 }
 0x24d   :  { %448 = vmatpush.msra.mxu3 %v861_v1 }
 0x24f   :  { %449 = vmatpush.msra.mxu3 %v870_v3 }
 0x251   :  { %450 = vmatpush.msra.mxu3 %v875_v4 }
 0x253   :  { %451 = vmatpush.msra.mxu3 %v889_v7  ;;  %v229_v7 = vld [vmem:[#allocation2 + $0x4] sm:$0x3] }
 0x2cf   :  { %v181_v41 = vpop.f32.mrf.mxu3 }
 0x2d0   :  { %v204_v42 = vadd.f32 %v181_v41, %v925_v11  ;;  %v184_v44 = vadd.f32 %v181_v41, %v161_v43 }
 0x2d2   :  { %206 = vrot.lane.b32.xlu0 %v204_v42, %s802_s25  ;;  %v705_v45 = vmul.f32 -1.442695, %v184_v44 }
 0x2d4   :  { %733 = vpow2.f32 %v705_v45 }
 0x2da   :  { %v734_v46 = vpop.eup %733 }
 0x2db   :  { %v188_v47 = vadd.f32 1.0, %v734_v46 }
 0x2dd   :  { %735 = vrcp.f32 %v188_v47  ;;  %v200_v53 = vand.u32 2147483648, %v188_v47  ;;  %vm194_vm10 = vweird.f32 %v188_v47  ;;  %v198_v54 = vand.u32 2147483647, %v188_v47 }
 0x2df   :  { %v201_v56 = vor.u32 1.1754944e-38, %v200_v53  ;;  %vm199_vm12 = vcmp.eq.f32.partialorder %v198_v54, 8.507059e+37 }
 0x2e3   :  { %v736_v48 = vpop.eup %735 }
 0x2e4   :  { %v190_v49 = vmul.f32 %v736_v48, %v188_v47  ;;  %vm195_vm9 = vweird.f32 %v736_v48 }
 0x2e5   :  { %vm196_vm11 = vmor %vm194_vm10, %vm195_vm9 }
 0x2e6   :  { %v191_v50 = vsub.f32 1.0, %v190_v49 }
 0x2e8   :  { %v192_v51 = vmul.f32 %v736_v48, %v191_v50 }
 0x2ea   :  { %v193_v52 = vadd.f32 %v736_v48, %v192_v51 }
 0x2ec   :  { %v197_v55 = vsel %vm196_vm11, %v736_v48, %v193_v52 }
 0x2ed   :  { %v202_v58 = vsel %vm199_vm12, %v201_v56, %v197_v55 }
 0x2ee   :  { %v216_v63 = vsub.f32 1.0, %v202_v58  ;;  %v222_v1 = vmul.f32 %v202_v58, %v154_v39 }
 0x344   :  { %v207_v57 = vpop.permute.xlu0 %206 }
 0x345   :  { %v209_v59 = vmul.f32 %v207_v57, %v202_v58  ;;  %v33_v57 = vld [vmem:[%s1025_s0 + $0x8] sm:$0xff] }
 0x346   :  { %701 = vmatmul.msk.f32.gmra.mxu0 %vm39_vm1, %v33_v57 }
 0x347   :  { %211 = vrot.lane.b32.xlu1 %v209_v59, %s802_s25 }
 0x3b9   :  { %v212_v60 = vpop.permute.xlu1 %211 }
 0x3ba   :  { %v214_v61 = vadd.f32 %v212_v60, %v161_v43 }
 0x3bc   :  { %737 = vtanh.f32 %v214_v61 }
 0x3c2   :  { %v738_v62 = vpop.eup %737 }
 0x3c3   :  { %218 = vrot.lane.b32.xlu2 %v738_v62, %s803_s4 }
 0x41d   :  { %v219_v0 = vpop.permute.xlu2 %218 }
 0x41e   :  { %v221_v2 = vmul.f32 %v219_v0, %v216_v63  ;;  %v642_v63 = vld [vmem:[%s1031_s6 + $0x18] sm:$0xff]  ;;  %v641_v0 = vld [vmem:[%s1031_s6 + $0x10] sm:$0xff] }
 0x41f   :  { %665 = vmatpush.msrb.mxu2 %v642_v63 }
 0x420   :  { %v223_v3 = vadd.f32 %v222_v1, %v221_v2  ;;  %v640_v1 = vld [vmem:[%s1031_s6 + $0x8] sm:$0xff]  ;;  %v639_v2 = vld [vmem:[%s1031_s6] sm:$0xff] }
 0x421   :  { %666 = vmatpush.msrb.mxu2 %v641_v0 }
 0x422   :  { %225 = vrot.lane.b32.xlu0 %v223_v3, %s803_s4 }
 0x423   :  { %667 = vmatpush.msrb.mxu2 %v640_v1 }
 0x425   :  { %668 = vmatpush.msrb.mxu2 %v639_v2 }
 0x494   :  { %v226_v4 = vpop.permute.xlu0 %225 }
 0x495   :  { %228 = vst.msk [vmem:[#allocation3 + $0x2] sm:$0x3] %vm159_vm8, %v226_v4  ;;  %706 = vmatmul.msk.f32.vlgmr.msrb.gmra.mxu3 %vm85_vm2, %v226_v4  ;;  %v70_v4 = vpop.f32.mrf.mxu0 }
 0x518   :  { %v249_v5 = vpop.f32.mrf.mxu3 }
 0x519   :  { %v272_v6 = vadd.f32 %v249_v5, %v925_v11  ;;  %v252_v9 = vadd.f32 %v249_v5, %v229_v7  ;;  %v71_v5 = vadd.f32 %v921_v8, %v70_v4 }
 0x51b   :  { %274 = vrot.lane.b32.xlu1 %v272_v6, %s802_s25  ;;  %v707_v10 = vmul.f32 -1.442695, %v252_v9  ;;  %75 = vst.msk [vmem:[#allocation2 + $0x8] sm:$0xff] %vm73_vm3, %v71_v5 }
 0x51d   :  { %739 = vpow2.f32 %v707_v10  ;;  %v983_v10 = vld [vmem:[%s1032_s7] ss:$0 sm:$0xff]  ;;  %s804_s7 = smov [#allocation4]  }
 0x51e   :  { %s686_s16 = sshll.u32 %s804_s7, 4  ;;  %s687_s16 = int_to_ptr.vmem [resolvable:$true] %s686_s16 }
 0x522   :  { %v365_v8 = vld [vmem:[#allocation2 + $0x8] sm:$0x3]  ;;  %v501_v5 = vld [vmem:[#allocation2 + $0xc] sm:$0x3] }
 0x523   :  { %v740_v12 = vpop.eup %739 }
 0x524   :  { %v256_v13 = vadd.f32 1.0, %v740_v12 }
 0x526   :  { %741 = vrcp.f32 %v256_v13  ;;  %v268_v19 = vand.u32 2147483648, %v256_v13  ;;  %vm262_vm14 = vweird.f32 %v256_v13  ;;  %v266_v20 = vand.u32 2147483647, %v256_v13 }
 0x528   :  { %v269_v22 = vor.u32 1.1754944e-38, %v268_v19  ;;  %vm267_vm0 = vcmp.eq.f32.partialorder %v266_v20, 8.507059e+37 }
 0x52c   :  { %v742_v14 = vpop.eup %741 }
 0x52d   :  { %v258_v15 = vmul.f32 %v742_v14, %v256_v13  ;;  %vm263_vm13 = vweird.f32 %v742_v14 }
 0x52e   :  { %vm264_vm15 = vmor %vm262_vm14, %vm263_vm13 }
 0x52f   :  { %v259_v16 = vsub.f32 1.0, %v258_v15 }
 0x531   :  { %v260_v17 = vmul.f32 %v742_v14, %v259_v16 }
 0x533   :  { %v261_v18 = vadd.f32 %v742_v14, %v260_v17 }
 0x535   :  { %v265_v21 = vsel %vm264_vm15, %v742_v14, %v261_v18 }
 0x536   :  { %v270_v24 = vsel %vm267_vm0, %v269_v22, %v265_v21 }
 0x537   :  { %v284_v29 = vsub.f32 1.0, %v270_v24  ;;  %v290_v31 = vmul.f32 %v270_v24, %v223_v3 }
 0x58d   :  { %v275_v23 = vpop.permute.xlu1 %274 }
 0x58e   :  { %v277_v25 = vmul.f32 %v275_v23, %v270_v24 }
 0x590   :  { %279 = vrot.lane.b32.xlu2 %v277_v25, %s802_s25 }
 0x5ea   :  { %v280_v26 = vpop.permute.xlu2 %279 }
 0x5eb   :  { %v282_v27 = vadd.f32 %v280_v26, %v229_v7 }
 0x5ed   :  { %743 = vtanh.f32 %v282_v27 }
 0x5f3   :  { %v744_v28 = vpop.eup %743 }
 0x5f4   :  { %286 = vrot.lane.b32.xlu0 %v744_v28, %s803_s4 }
 0x666   :  { %v287_v30 = vpop.permute.xlu0 %286 }
 0x667   :  { %v289_v32 = vmul.f32 %v287_v30, %v284_v29 }
 0x669   :  { %v291_v33 = vadd.f32 %v290_v31, %v289_v32 }
 0x66b   :  { %293 = vrot.lane.b32.xlu1 %v291_v33, %s803_s4 }
 0x6dd   :  { %v294_v34 = vpop.permute.xlu1 %293 }
 0x6de   :  { %296 = vst.msk [vmem:[#allocation3 + $0x4] sm:$0x3] %vm159_vm8, %v294_v34  ;;  %708 = vmatmul.msk.f32.vlgmr.msrb.gmra.mxu1 %vm85_vm2, %v294_v34 }
 0x75b   :  { %v317_v35 = vpop.f32.mrf.mxu1 }
 0x75c   :  { %v340_v36 = vadd.f32 %v317_v35, %v925_v11  ;;  %v320_v38 = vadd.f32 %v317_v35, %v297_v37 }
 0x75e   :  { %342 = vrot.lane.b32.xlu2 %v340_v36, %s802_s25  ;;  %v709_v39 = vmul.f32 -1.442695, %v320_v38 }
 0x760   :  { %745 = vpow2.f32 %v709_v39 }
 0x766   :  { %v746_v40 = vpop.eup %745 }
 0x767   :  { %v324_v41 = vadd.f32 1.0, %v746_v40 }
 0x769   :  { %747 = vrcp.f32 %v324_v41  ;;  %v336_v47 = vand.u32 2147483648, %v324_v41  ;;  %vm330_vm5 = vweird.f32 %v324_v41  ;;  %v334_v48 = vand.u32 2147483647, %v324_v41 }
 0x76b   :  { %v337_v50 = vor.u32 1.1754944e-38, %v336_v47  ;;  %vm335_vm7 = vcmp.eq.f32.partialorder %v334_v48, 8.507059e+37 }
 0x76f   :  { %v748_v42 = vpop.eup %747 }
 0x770   :  { %v326_v43 = vmul.f32 %v748_v42, %v324_v41  ;;  %vm331_vm4 = vweird.f32 %v748_v42  ;;  %v433_v41 = vld [vmem:[#allocation2 + $0xa] sm:$0x3] }
 0x771   :  { %vm332_vm6 = vmor %vm330_vm5, %vm331_vm4 }
 0x772   :  { %v327_v44 = vsub.f32 1.0, %v326_v43 }
 0x774   :  { %v328_v45 = vmul.f32 %v748_v42, %v327_v44 }
 0x776   :  { %v329_v46 = vadd.f32 %v748_v42, %v328_v45 }
 0x778   :  { %v333_v49 = vsel %vm332_vm6, %v748_v42, %v329_v46 }
 0x779   :  { %v338_v52 = vsel %vm335_vm7, %v337_v50, %v333_v49 }
 0x77a   :  { %v352_v58 = vsub.f32 1.0, %v338_v52  ;;  %v358_v60 = vmul.f32 %v338_v52, %v291_v33 }
 0x7b8   :  { %v343_v51 = vpop.permute.xlu2 %342 }
 0x7b9   :  { %v345_v53 = vmul.f32 %v343_v51, %v338_v52 }
 0x7bb   :  { %347 = vrot.lane.b32.xlu0 %v345_v53, %s802_s25 }
 0x82d   :  { %v348_v54 = vpop.permute.xlu0 %347 }
 0x82e   :  { %v350_v55 = vadd.f32 %v348_v54, %v297_v37 }
 0x830   :  { %749 = vtanh.f32 %v350_v55 }
 0x836   :  { %v750_v56 = vpop.eup %749 }
 0x837   :  { %354 = vrot.lane.b32.xlu1 %v750_v56, %s803_s4 }
 0x8a9   :  { %v355_v59 = vpop.permute.xlu1 %354 }
 0x8aa   :  { %v357_v61 = vmul.f32 %v355_v59, %v352_v58 }
 0x8ac   :  { %v359_v62 = vadd.f32 %v358_v60, %v357_v61 }
 0x8ae   :  { %361 = vrot.lane.b32.xlu2 %v359_v62, %s803_s4 }
 0x908   :  { %v362_v3 = vpop.permute.xlu2 %361 }
 0x909   :  { %364 = vst.msk [vmem:[#allocation3 + $0x6] sm:$0x3] %vm159_vm8, %v362_v3  ;;  %710 = vmatmul.msk.f32.vlgmr.msra.gmra.mxu2 %vm85_vm2, %v362_v3 }
 0x910   :  { %v637_v6 = vld [vmem:[#allocation3] sm:$0xff] }
 0x911   :  { %718 = vmatmul.msk.f32.vlgmr.msrb.gmra.mxu2 %vm85_vm2, %v637_v6 }
 0x98c   :  { %v385_v7 = vpop.f32.mrf.mxu2 }
 0x98d   :  { %v408_v9 = vadd.f32 %v385_v7, %v925_v11  ;;  %v388_v14 = vadd.f32 %v385_v7, %v365_v8 }
 0x98f   :  { %410 = vrot.lane.b32.xlu0 %v408_v9, %s802_s25  ;;  %v711_v15 = vmul.f32 -1.442695, %v388_v14 }
 0x991   :  { %751 = vpow2.f32 %v711_v15 }
 0x994   :  { %v670_v12 = vpop.f32.mrf.mxu2 }
 0x995   :  { %v671_v13 = vadd.f32 %v983_v10, %v670_v12 }
 0x997   :  { %676 = vst.msk [vmem:[%s1033_s8] sm:$0xff] %vm39_vm1, %v671_v13  ;;  %v752_v16 = vpop.eup %751 }
 0x998   :  { %v392_v17 = vadd.f32 1.0, %v752_v16 }
 0x99a   :  { %753 = vrcp.f32 %v392_v17  ;;  %v404_v23 = vand.u32 2147483648, %v392_v17  ;;  %vm398_vm9 = vweird.f32 %v392_v17  ;;  %v402_v24 = vand.u32 2147483647, %v392_v17 }
 0x99c   :  { %v405_v26 = vor.u32 1.1754944e-38, %v404_v23  ;;  %vm403_vm11 = vcmp.eq.f32.partialorder %v402_v24, 8.507059e+37 }
 0x9a0   :  { %v754_v18 = vpop.eup %753 }
 0x9a1   :  { %v394_v19 = vmul.f32 %v754_v18, %v392_v17  ;;  %vm399_vm3 = vweird.f32 %v754_v18 }
 0x9a2   :  { %vm400_vm10 = vmor %vm398_vm9, %vm399_vm3 }
 0x9a3   :  { %v395_v20 = vsub.f32 1.0, %v394_v19 }
 0x9a5   :  { %v396_v21 = vmul.f32 %v754_v18, %v395_v20 }
 0x9a7   :  { %v397_v22 = vadd.f32 %v754_v18, %v396_v21 }
 0x9a9   :  { %v401_v25 = vsel %vm400_vm10, %v754_v18, %v397_v22 }
 0x9aa   :  { %v406_v28 = vsel %vm403_vm11, %v405_v26, %v401_v25 }
 0x9ab   :  { %v420_v33 = vsub.f32 1.0, %v406_v28  ;;  %v426_v35 = vmul.f32 %v406_v28, %v359_v62 }
 0xa01   :  { %v411_v27 = vpop.permute.xlu0 %410 }
 0xa02   :  { %v413_v29 = vmul.f32 %v411_v27, %v406_v28 }
 0xa04   :  { %415 = vrot.lane.b32.xlu1 %v413_v29, %s802_s25 }
 0xa76   :  { %v416_v30 = vpop.permute.xlu1 %415 }
 0xa77   :  { %v418_v31 = vadd.f32 %v416_v30, %v365_v8 }
 0xa79   :  { %755 = vtanh.f32 %v418_v31 }
 0xa7f   :  { %v756_v32 = vpop.eup %755 }
 0xa80   :  { %422 = vrot.lane.b32.xlu2 %v756_v32, %s803_s4 }
 0xada   :  { %v423_v34 = vpop.permute.xlu2 %422 }
 0xadb   :  { %v425_v36 = vmul.f32 %v423_v34, %v420_v33 }
 0xadd   :  { %v427_v37 = vadd.f32 %v426_v35, %v425_v36  ;;  %v569_v35 = vld [vmem:[#allocation2 + $0xe] sm:$0x3] }
 0xadf   :  { %429 = vrot.lane.b32.xlu0 %v427_v37, %s803_s4 }
 0xb51   :  { %v430_v38 = vpop.permute.xlu0 %429 }
 0xb52   :  { %432 = vst.msk [vmem:[#allocation3 + $0x8] sm:$0x3] %vm159_vm8, %v430_v38  ;;  %712 = vmatmul.msk.f32.vlgmr.msra.gmra.mxu3 %vm85_vm2, %v430_v38 }
 0xbd5   :  { %v453_v39 = vpop.f32.mrf.mxu3 }
 0xbd6   :  { %v476_v40 = vadd.f32 %v453_v39, %v925_v11  ;;  %v456_v42 = vadd.f32 %v453_v39, %v433_v41 }
 0xbd8   :  { %478 = vrot.lane.b32.xlu1 %v476_v40, %s802_s25  ;;  %v713_v43 = vmul.f32 -1.442695, %v456_v42 }
 0xbda   :  { %757 = vpow2.f32 %v713_v43 }
 0xbe0   :  { %v758_v44 = vpop.eup %757 }
 0xbe1   :  { %v460_v45 = vadd.f32 1.0, %v758_v44 }
 0xbe3   :  { %759 = vrcp.f32 %v460_v45  ;;  %v472_v51 = vand.u32 2147483648, %v460_v45  ;;  %vm466_vm13 = vweird.f32 %v460_v45  ;;  %v470_v52 = vand.u32 2147483647, %v460_v45 }
 0xbe5   :  { %v473_v54 = vor.u32 1.1754944e-38, %v472_v51  ;;  %vm471_vm15 = vcmp.eq.f32.partialorder %v470_v52, 8.507059e+37 }
 0xbe9   :  { %v760_v46 = vpop.eup %759 }
 0xbea   :  { %v462_v47 = vmul.f32 %v760_v46, %v460_v45  ;;  %vm467_vm12 = vweird.f32 %v760_v46 }
 0xbeb   :  { %vm468_vm14 = vmor %vm466_vm13, %vm467_vm12 }
 0xbec   :  { %v463_v48 = vsub.f32 1.0, %v462_v47 }
 0xbee   :  { %v464_v49 = vmul.f32 %v760_v46, %v463_v48 }
 0xbf0   :  { %v465_v50 = vadd.f32 %v760_v46, %v464_v49 }
 0xbf2   :  { %v469_v53 = vsel %vm468_vm14, %v760_v46, %v465_v50 }
 0xbf3   :  { %v474_v56 = vsel %vm471_vm15, %v473_v54, %v469_v53 }
 0xbf4   :  { %v488_v61 = vsub.f32 1.0, %v474_v56  ;;  %v494_v63 = vmul.f32 %v474_v56, %v427_v37 }
 0xc4a   :  { %v479_v55 = vpop.permute.xlu1 %478 }
 0xc4b   :  { %v481_v57 = vmul.f32 %v479_v55, %v474_v56 }
 0xc4d   :  { %483 = vrot.lane.b32.xlu2 %v481_v57, %s802_s25 }
 0xca7   :  { %v484_v58 = vpop.permute.xlu2 %483 }
 0xca8   :  { %v486_v59 = vadd.f32 %v484_v58, %v433_v41 }
 0xcaa   :  { %761 = vtanh.f32 %v486_v59 }
 0xcb0   :  { %v762_v60 = vpop.eup %761 }
 0xcb1   :  { %490 = vrot.lane.b32.xlu0 %v762_v60, %s803_s4 }
 0xd23   :  { %v491_v62 = vpop.permute.xlu0 %490 }
 0xd24   :  { %v493_v0 = vmul.f32 %v491_v62, %v488_v61 }
 0xd26   :  { %v495_v1 = vadd.f32 %v494_v63, %v493_v0 }
 0xd28   :  { %497 = vrot.lane.b32.xlu1 %v495_v1, %s803_s4 }
 0xd9a   :  { %v498_v2 = vpop.permute.xlu1 %497 }
 0xd9b   :  { %500 = vst.msk [vmem:[#allocation3 + $0xa] sm:$0x3] %vm159_vm8, %v498_v2  ;;  %714 = vmatmul.msk.f32.vlgmr.msrb.gmra.mxu0 %vm85_vm2, %v498_v2 }
 0xe18   :  { %v521_v3 = vpop.f32.mrf.mxu0 }
 0xe19   :  { %v544_v4 = vadd.f32 %v521_v3, %v925_v11  ;;  %v524_v6 = vadd.f32 %v521_v3, %v501_v5 }
 0xe1b   :  { %546 = vrot.lane.b32.xlu2 %v544_v4, %s802_s25  ;;  %v715_v7 = vmul.f32 -1.442695, %v524_v6 }
 0xe1d   :  { %763 = vpow2.f32 %v715_v7 }
 0xe23   :  { %v764_v9 = vpop.eup %763 }
 0xe24   :  { %v528_v12 = vadd.f32 1.0, %v764_v9 }
 0xe26   :  { %765 = vrcp.f32 %v528_v12  ;;  %v540_v17 = vand.u32 2147483648, %v528_v12  ;;  %vm534_vm4 = vweird.f32 %v528_v12  ;;  %v538_v18 = vand.u32 2147483647, %v528_v12 }
 0xe28   :  { %v541_v20 = vor.u32 1.1754944e-38, %v540_v17  ;;  %vm539_vm6 = vcmp.eq.f32.partialorder %v538_v18, 8.507059e+37 }
 0xe2c   :  { %v766_v13 = vpop.eup %765 }
 0xe2d   :  { %v530_v8 = vmul.f32 %v766_v13, %v528_v12  ;;  %vm535_vm0 = vweird.f32 %v766_v13 }
 0xe2e   :  { %vm536_vm5 = vmor %vm534_vm4, %vm535_vm0 }
 0xe2f   :  { %v531_v14 = vsub.f32 1.0, %v530_v8 }
 0xe31   :  { %v532_v15 = vmul.f32 %v766_v13, %v531_v14 }
 0xe33   :  { %v533_v16 = vadd.f32 %v766_v13, %v532_v15 }
 0xe35   :  { %v537_v19 = vsel %vm536_vm5, %v766_v13, %v533_v16 }
 0xe36   :  { %v542_v22 = vsel %vm539_vm6, %v541_v20, %v537_v19 }
 0xe37   :  { %v556_v27 = vsub.f32 1.0, %v542_v22  ;;  %v562_v29 = vmul.f32 %v542_v22, %v495_v1 }
 0xe75   :  { %v547_v21 = vpop.permute.xlu2 %546 }
 0xe76   :  { %v549_v23 = vmul.f32 %v547_v21, %v542_v22 }
 0xe78   :  { %551 = vrot.lane.b32.xlu0 %v549_v23, %s802_s25 }
 0xeea   :  { %v552_v24 = vpop.permute.xlu0 %551 }
 0xeeb   :  { %v554_v25 = vadd.f32 %v552_v24, %v501_v5 }
 0xeed   :  { %767 = vtanh.f32 %v554_v25 }
 0xef3   :  { %v768_v26 = vpop.eup %767 }
 0xef4   :  { %558 = vrot.lane.b32.xlu1 %v768_v26, %s803_s4 }
 0xf66   :  { %v559_v28 = vpop.permute.xlu1 %558 }
 0xf67   :  { %v561_v30 = vmul.f32 %v559_v28, %v556_v27 }
 0xf69   :  { %v563_v31 = vadd.f32 %v562_v29, %v561_v30 }
 0xf6b   :  { %565 = vrot.lane.b32.xlu2 %v563_v31, %s803_s4 }
 0xfc5   :  { %v566_v32 = vpop.permute.xlu2 %565 }
 0xfc6   :  { %568 = vst.msk [vmem:[#allocation3 + $0xc] sm:$0x3] %vm159_vm8, %v566_v32  ;;  %716 = vmatmul.msk.f32.vlgmr.msra.gmra.mxu1 %vm85_vm2, %v566_v32 }
0x1043   :  { %v589_v33 = vpop.f32.mrf.mxu1 }
0x1044   :  { %v612_v34 = vadd.f32 %v589_v33, %v925_v11  ;;  %v592_v36 = vadd.f32 %v589_v33, %v569_v35 }
0x1046   :  { %614 = vrot.lane.b32.xlu0 %v612_v34, %s802_s25  ;;  %v717_v37 = vmul.f32 -1.442695, %v592_v36 }
0x1048   :  { %769 = vpow2.f32 %v717_v37 }
0x104e   :  { %v770_v38 = vpop.eup %769 }
0x104f   :  { %v596_v39 = vadd.f32 1.0, %v770_v38 }
0x1051   :  { %771 = vrcp.f32 %v596_v39  ;;  %v608_v45 = vand.u32 2147483648, %v596_v39  ;;  %vm602_vm3 = vweird.f32 %v596_v39  ;;  %v606_v46 = vand.u32 2147483647, %v596_v39 }
0x1053   :  { %v609_v47 = vor.u32 1.1754944e-38, %v608_v45  ;;  %vm607_vm10 = vcmp.eq.f32.partialorder %v606_v46, 8.507059e+37 }
0x1057   :  { %v772_v40 = vpop.eup %771 }
0x1058   :  { %v598_v41 = vmul.f32 %v772_v40, %v596_v39  ;;  %vm603_vm7 = vweird.f32 %v772_v40 }
0x1059   :  { %vm604_vm9 = vmor %vm602_vm3, %vm603_vm7 }
0x105a   :  { %v599_v42 = vsub.f32 1.0, %v598_v41 }
0x105c   :  { %v600_v43 = vmul.f32 %v772_v40, %v599_v42 }
0x105e   :  { %v601_v44 = vadd.f32 %v772_v40, %v600_v43 }
0x1060   :  { %v605_v11 = vsel %vm604_vm9, %v772_v40, %v601_v44 }
0x1061   :  { %v610_v49 = vsel %vm607_vm10, %v609_v47, %v605_v11 }
0x1062   :  { %v624_v54 = vsub.f32 1.0, %v610_v49  ;;  %v630_v56 = vmul.f32 %v610_v49, %v563_v31 }
0x10b8   :  { %v615_v48 = vpop.permute.xlu0 %614 }
0x10b9   :  { %v617_v50 = vmul.f32 %v615_v48, %v610_v49 }
0x10bb   :  { %619 = vrot.lane.b32.xlu1 %v617_v50, %s802_s25 }
0x112d   :  { %v620_v51 = vpop.permute.xlu1 %619 }
0x112e   :  { %v622_v52 = vadd.f32 %v620_v51, %v569_v35 }
0x1130   :  { %773 = vtanh.f32 %v622_v52 }
0x1136   :  { %v774_v53 = vpop.eup %773 }
0x1137   :  { %626 = vrot.lane.b32.xlu2 %v774_v53, %s803_s4 }
0x1191   :  { %v627_v55 = vpop.permute.xlu2 %626 }
0x1192   :  { %v629_v57 = vmul.f32 %v627_v55, %v624_v54 }
0x1194   :  { %v631_v58 = vadd.f32 %v630_v56, %v629_v57 }
0x1196   :  { %633 = vrot.lane.b32.xlu0 %v631_v58, %s803_s4 }
0x1208   :  { %v634_v59 = vpop.permute.xlu0 %633 }
0x1209   :  { %636 = vst.msk [vmem:[#allocation3 + $0xe] sm:$0x3] %vm159_vm8, %v634_v59 }
0x120a   :  { %678 = vst.msk [vmem:[#allocation4] sm:$0x3] %vm159_vm8, %v634_v59 }
0x120b   :  { %691 = dma.vmem_to_hbm [thread:$0]  %s687_s16, 32, %s689_s18, [#allocation5]  }
0x1210   :  { %v638_v60 = vld [vmem:[#allocation3 + $0x8] sm:$0xff] }
0x1211   :  { %719 = vmatmul.msk.f32.gmra.mxu2 %vm85_vm2, %v638_v60 }
0x1294   :  { %v673_v61 = vpop.f32.mrf.mxu2 }
0x1295   :  { %v674_v62 = vadd.f32 %v983_v10, %v673_v61 }
0x1297   :  { %677 = vst.msk [vmem:[%s1033_s8 + $0x8] sm:$0xff] %vm39_vm1, %v674_v62 }
0x1298   :  { %799 = dma.done.wait [#allocation5], 32  }
0x1299   :  { %800 = vsyncadd [#allocation5], 4294967264 }
0x129a   :  { %698 = vsyncpa [#allocation5], 1 }

</bundles_post_ra>
